<compile_context>
chip_gen: v7x
topology: tpu7x:2x2x1
jax: 0.10.0
libtpu: 0.0.40
codegen_flags: <defaults>
</compile_context>

<pallas_src>
import functools

import jax
import jax.numpy as jnp
from jax.experimental import pallas as pl
from jax.experimental.pallas import tpu as pltpu


def _layer_norm(x, gamma, beta, eps=1e-5):
    # Fused single-pass statistics: E[x] and E[x^2] (one read of x, one pair
    # of lane reductions) instead of the two-pass (x - mu) form.
    mu = jnp.mean(x, axis=-1, keepdims=True)
    ms = jnp.mean(x * x, axis=-1, keepdims=True)
    var = ms - mu * mu
    return (x - mu) * jax.lax.rsqrt(var + eps) * gamma + beta


def encoder_kernel(x_ref,
                   wqkv_ref, bqkv_ref, wo_ref, bo_ref, g1_ref, be1_ref,
                   w1_ref, bf1_ref, w2_ref, bf2_ref, g2_ref, be2_ref,
                   out_ref, *, num_heads, dim_qk):
    l = pl.program_id(1)                     # layer axis (innermost, "arbitrary")
    H, dq = num_heads, dim_qk
    f32, bf16 = jnp.float32, jnp.bfloat16

    # Layer 0: seed the resident output block with the encoder input.
    # (Output blocks are never pre-loaded from HBM, so the input ref + this
    #  seed are kept even though x's HBM buffer is aliased to the output.)
    @pl.when(l == 0)
    def _():
        out_ref[...] = x_ref[...]

    x = out_ref[0]                           # (S, D) f32 carried activation
    S, D = x.shape
    x_bf = x.astype(bf16)

    # ---- multi-head attention: all heads batched on a leading head axis ----
    # Fused per-head-packed QKV projection: one batched MXU einsum, one bias.
    xh = jnp.broadcast_to(x_bf, (H, S, D))
    qkv = jnp.einsum('hsd,hde->hse', xh, wqkv_ref[0],
                     preferred_element_type=f32) + bqkv_ref[0]   # (H, S, 3*dq)

    inv_scale = 1.0 / (float(dq) ** 0.5)
    q = (qkv[..., :dq] * inv_scale).astype(bf16)   # 1/sqrt(dq) folded into q
    k = qkv[..., dq:2 * dq].astype(bf16)
    v = qkv[..., 2 * dq:].astype(bf16)

    s = jnp.einsum('hqd,hkd->hqk', q, k, preferred_element_type=f32)  # (H,S,S)
    s = s - jnp.max(s, axis=-1, keepdims=True)
    p = jnp.exp(s)
    p = p * pl.reciprocal(jnp.sum(p, axis=-1, keepdims=True), approx=True)

    ctx = jnp.einsum('hqk,hkd->hqd', p.astype(bf16), v,
                     preferred_element_type=f32)                  # (H, S, dq)

    # Output projection folded per head (no concatenate): sum_h ctx_h @ Wo_h.
    proj = jnp.einsum('hsd,hdf->hsf', ctx.astype(bf16), wo_ref[0],
                      preferred_element_type=f32)                 # (H, S, D)
    attn = jnp.sum(proj, axis=0) + bo_ref[0]                      # (S, D)

    # TODO(synk): nn.Dropout(0.1) is identity in eval mode; training-mode
    # random dropout is not implemented.
    h1 = _layer_norm(x + attn, g1_ref[0], be1_ref[0])

    # ---- feed forward ----
    ff = jnp.dot(h1.astype(bf16), w1_ref[0],
                 preferred_element_type=f32) + bf1_ref[0]
    ff = jnp.maximum(ff, 0.0)
    ff = jnp.dot(ff.astype(bf16), w2_ref[0],
                 preferred_element_type=f32) + bf2_ref[0]

    out_ref[0] = _layer_norm(h1 + ff, g2_ref[0], be2_ref[0])


def _vmem_limit_bytes():
    # Per-generation scoped VMEM budget with headroom:
    #   v5e/v6e (128 MiB physical) -> 96 MiB; v7x (64 MiB physical) -> 48 MiB.
    try:
        cap = int(pltpu.get_tpu_info().vmem_capacity_bytes)
    except Exception:
        cap = 64 * 1024 * 1024          # conservative (v7x-sized) fallback
    return min((cap * 3) // 4, 96 * 1024 * 1024)


def transformer_encoder(x, params, num_heads, dim_qk):
    """x: (B, S, D) float32; params: dict of layer-stacked arrays (L leading)."""
    B, S, D = x.shape
    L = params['wqkv'].shape[0]
    H, dq = num_heads, dim_qk
    F = params['w1'].shape[-1]

    # Store matmul weights in bf16 (MXU inputs); biases / layernorm stay f32.
    bf16 = jnp.bfloat16
    param_list = [
        params['wqkv'].astype(bf16), params['bqkv'],
        params['wo'].astype(bf16),   params['bo'],
        params['g1'],                params['be1'],
        params['w1'].astype(bf16),   params['bf1'],
        params['w2'].astype(bf16),   params['bf2'],
        params['g2'],                params['be2'],
    ]

    def per_layer_spec(arr):
        return pl.BlockSpec((1,) + arr.shape[1:],
                            lambda b, l, nd=arr.ndim: (l,) + (0,) * (nd - 1))

    act_spec = pl.BlockSpec((1, S, D), lambda b, l: (b, 0, 0))
    in_specs = [act_spec] + [per_layer_spec(a) for a in param_list]

    kernel = functools.partial(encoder_kernel, num_heads=H, dim_qk=dq)

    # Advisory cost estimate so XLA schedules around the long custom call.
    flops_per_layer = (2 * S * D * H * 3 * dq          # qkv projection
                       + 2 * H * S * S * dq            # scores
                       + 2 * H * S * S * dq            # context
                       + 2 * S * H * dq * D            # output projection
                       + 2 * S * D * F + 2 * S * F * D)  # feed forward
    flops = B * L * flops_per_layer
    transcendentals = B * L * (H * S * S + (2 + H) * S)   # exp + rsqrt/recip
    weight_bytes = sum(int(a.size) * a.dtype.itemsize for a in param_list)
    bytes_accessed = B * weight_bytes + 2 * int(x.size) * x.dtype.itemsize

    return pl.pallas_call(
        kernel,
        out_shape=jax.ShapeDtypeStruct((B, S, D), jnp.float32),
        grid_spec=pltpu.PrefetchScalarGridSpec(
            num_scalar_prefetch=0,
            grid=(B, L),                  # layer axis innermost: carried state
            in_specs=in_specs,
            out_specs=act_spec,
        ),
        input_output_aliases={0: 0},      # donate x's HBM buffer to the output
        compiler_params=pltpu.CompilerParams(
            dimension_semantics=("parallel", "arbitrary"),
            vmem_limit_bytes=_vmem_limit_bytes()),
        cost_estimate=pl.CostEstimate(
            flops=int(flops),
            transcendentals=int(transcendentals),
            bytes_accessed=int(bytes_accessed)),
    )(x, *param_list)


def init_params(key, num_layers, dim_model, num_heads, dim_ff):
    """PyTorch-default U[-1/sqrt(fan_in), 1/sqrt(fan_in)] init, layer-stacked,
    with per-head-packed attention weights:
        wqkv: (L, H, D, 3*dq)   -- [q | k | v] along the last axis
        bqkv: (L, H, 1, 3*dq)
        wo  : (L, H, dq, D)     -- head-major rows of the torch (H*dq, D) weight
    """
    dq = max(dim_model // num_heads, 1)
    L, H, D, F = num_layers, num_heads, dim_model, dim_ff

    def uniform(k, shape, fan_in):
        bound = 1.0 / (fan_in ** 0.5)
        return jax.random.uniform(k, shape, jnp.float32, -bound, bound)

    keys = jax.random.split(key, 8)
    params = {
        'wqkv': uniform(keys[0], (L, H, D, 3 * dq), D),
        'bqkv': uniform(keys[1], (L, H, 1, 3 * dq), D),
        'wo':   uniform(keys[2], (L, H, dq, D), H * dq),
        'bo':   uniform(keys[3], (L, 1, D), H * dq),
        'g1':   jnp.ones((L, 1, D), jnp.float32),
        'be1':  jnp.zeros((L, 1, D), jnp.float32),
        'w1':   uniform(keys[4], (L, D, F), D),
        'bf1':  uniform(keys[5], (L, 1, F), D),
        'w2':   uniform(keys[6], (L, F, D), F),
        'bf2':  uniform(keys[7], (L, 1, D), F),
        'g2':   jnp.ones((L, 1, D), jnp.float32),
        'be2':  jnp.zeros((L, 1, D), jnp.float32),
    }
    return params, dq


def reference_forward(x, params, num_heads, dim_qk):
    """Pure-JAX f32 reference mirroring the PyTorch forward (eval-mode dropout)."""
    L = params['wqkv'].shape[0]
    H, dq = num_heads, dim_qk
    for l in range(L):
        heads = []
        for h in range(H):
            w = params['wqkv'][l, h]          # (D, 3*dq)
            b = params['bqkv'][l, h]          # (1, 3*dq)
            q = x @ w[:, :dq] + b[:, :dq]
            k = x @ w[:, dq:2 * dq] + b[:, dq:2 * dq]
            v = x @ w[:, 2 * dq:] + b[:, 2 * dq:]
            s = jnp.einsum('bqd,bkd->bqk', q, k) / (dq ** 0.5)
            p = jax.nn.softmax(s, axis=-1)
            heads.append(jnp.einsum('bqk,bkd->bqd', p, v))
        cat = jnp.concatenate(heads, axis=-1)                 # torch.cat order
        wo = params['wo'][l].reshape(H * dq, -1)
        attn = cat @ wo + params['bo'][l]
        h1 = _layer_norm(x + attn, params['g1'][l], params['be1'][l])
        ff = jnp.maximum(h1 @ params['w1'][l] + params['bf1'][l], 0.0)
        ff = ff @ params['w2'][l] + params['bf2'][l]
        x = _layer_norm(h1 + ff, params['g2'][l], params['be2'][l])
    return x


if __name__ == "__main__":
    key = jax.random.PRNGKey(0)
    kx, kp = jax.random.split(key)

    # Small shapes consistent with the module defaults
    # (dim_model=8, num_heads=2, dim_feedforward=128).
    B, S = 2, 8
    num_layers, dim_model, num_heads, dim_ff = 2, 8, 2, 128

    x = jax.random.normal(kx, (B, S, dim_model), dtype=jnp.float32)
    params, dim_qk = init_params(kp, num_layers, dim_model, num_heads, dim_ff)

    # Compute the pure-f32 reference first (x's HBM buffer is donated to the
    # kernel output via input_output_aliases).
    ref = jax.block_until_ready(reference_forward(x, params, num_heads, dim_qk))

    out = transformer_encoder(x, params, num_heads, dim_qk)
    out = jax.block_until_ready(out)

    assert out.shape == (B, S, dim_model)
    max_err = float(jnp.max(jnp.abs(out - ref)))
    # Tolerance accounts for bf16 MXU inputs (f32 accumulation) and the EUP
    # approximate softmax reciprocal vs. a pure-f32 reference; real logic bugs
    # produce O(1) errors on these layernorm-scaled outputs.
    assert max_err < 8e-2, f"mismatch vs reference: {max_err}"

    print("KERNEL_OK")
</pallas_src>

<mosaic_0001>
module attributes {stable_mosaic.version = 11 : i64} {
  func.func @encoder_kernel(%arg0: i32, %arg1: i32, %arg2: memref<1x8x8xf32, #tpu.memory_space<vmem>>, %arg3: memref<1x2x8x12xbf16, #tpu.memory_space<vmem>>, %arg4: memref<1x2x1x12xf32, #tpu.memory_space<vmem>>, %arg5: memref<1x2x4x8xbf16, #tpu.memory_space<vmem>>, %arg6: memref<1x1x8xf32, #tpu.memory_space<vmem>>, %arg7: memref<1x1x8xf32, #tpu.memory_space<vmem>>, %arg8: memref<1x1x8xf32, #tpu.memory_space<vmem>>, %arg9: memref<1x8x128xbf16, #tpu.memory_space<vmem>>, %arg10: memref<1x1x128xf32, #tpu.memory_space<vmem>>, %arg11: memref<1x128x8xbf16, #tpu.memory_space<vmem>>, %arg12: memref<1x1x8xf32, #tpu.memory_space<vmem>>, %arg13: memref<1x1x8xf32, #tpu.memory_space<vmem>>, %arg14: memref<1x1x8xf32, #tpu.memory_space<vmem>>, %arg15: memref<1x8x8xf32, #tpu.memory_space<vmem>>) attributes {dimension_semantics = [#tpu.dimension_semantics<parallel>, #tpu.dimension_semantics<arbitrary>], iteration_bounds = array<i64: 2, 2>, scalar_prefetch = 0 : i64, scratch_operands = 0 : i64, tpu.core_type = #tpu.core_type<tc>, window_params = [{transform_indices = @transform_0, window_bounds = array<i64: 1, 8, 8>}, {transform_indices = @transform_1, window_bounds = array<i64: 1, 2, 8, 12>}, {transform_indices = @transform_2, window_bounds = array<i64: 1, 2, 1, 12>}, {transform_indices = @transform_3, window_bounds = array<i64: 1, 2, 4, 8>}, {transform_indices = @transform_4, window_bounds = array<i64: 1, 1, 8>}, {transform_indices = @transform_5, window_bounds = array<i64: 1, 1, 8>}, {transform_indices = @transform_6, window_bounds = array<i64: 1, 1, 8>}, {transform_indices = @transform_7, window_bounds = array<i64: 1, 8, 128>}, {transform_indices = @transform_8, window_bounds = array<i64: 1, 1, 128>}, {transform_indices = @transform_9, window_bounds = array<i64: 1, 128, 8>}, {transform_indices = @transform_10, window_bounds = array<i64: 1, 1, 8>}, {transform_indices = @transform_11, window_bounds = array<i64: 1, 1, 8>}, {transform_indices = @transform_12, window_bounds = array<i64: 1, 1, 8>}, {transform_indices = @transform_13, window_bounds = array<i64: 1, 8, 8>}]} {
    %c0_i32 = arith.constant 0 : i32
    %0 = arith.cmpi eq, %arg1, %c0_i32 : i32
    %1 = arith.extui %0 : i1 to i32
    %c0_i32_0 = arith.constant 0 : i32
    %2 = arith.cmpi ne, %1, %c0_i32_0 : i32
    scf.if %2 {
      %c0_65 = arith.constant 0 : index
      %c0_66 = arith.constant 0 : index
      %c0_67 = arith.constant 0 : index
      %120 = vector.load %arg2[%c0_65, %c0_66, %c0_67] : memref<1x8x8xf32, #tpu.memory_space<vmem>>, vector<1x8x8xf32>
      %c0_68 = arith.constant 0 : index
      %c0_69 = arith.constant 0 : index
      %c0_70 = arith.constant 0 : index
      %121 = vector.load %arg15[%c0_68, %c0_69, %c0_70] : memref<1x8x8xf32, #tpu.memory_space<vmem>>, vector<1x8x8xf32>
      tpu.vector_store %arg15[%c0_68, %c0_69, %c0_70], %120 {strides = array<i32>} : memref<1x8x8xf32, #tpu.memory_space<vmem>>, vector<1x8x8xf32>,
    } else {
    }
    %c0 = arith.constant 0 : index
    %c0_1 = arith.constant 0 : index
    %c0_2 = arith.constant 0 : index
    %3 = vector.load %arg15[%c0, %c0_1, %c0_2] : memref<1x8x8xf32, #tpu.memory_space<vmem>>, vector<1x8x8xf32>
    %4 = vector.shape_cast %3 : vector<1x8x8xf32> to vector<8x8xf32>
    %5 = arith.truncf %4 : vector<8x8xf32> to vector<8x8xbf16>
    %6 = vector.shape_cast %5 : vector<8x8xbf16> to vector<1x8x8xbf16>
    %7 = vector.broadcast %6 : vector<1x8x8xbf16> to vector<2x8x8xbf16>
    %c0_3 = arith.constant 0 : index
    %c0_4 = arith.constant 0 : index
    %c0_5 = arith.constant 0 : index
    %c0_6 = arith.constant 0 : index
    %8 = vector.load %arg3[%c0_3, %c0_4, %c0_5, %c0_6] : memref<1x2x8x12xbf16, #tpu.memory_space<vmem>>, vector<1x2x8x12xbf16>
    %9 = vector.shape_cast %8 : vector<1x2x8x12xbf16> to vector<2x8x12xbf16>
    "tpu.trace_start"() <{level = 10 : i32, message = "hsd,hde->hse"}> : () -> ()
    %cst = arith.constant dense<0.000000e+00> : vector<2x8x12xf32>
    %10 = tpu.matmul %7, %9, %cst {dimension_numbers = #tpu.dot_dimension_numbers<[2], [1], [1], [2], [0, 0, 0, 1, 1, 2], [0], [0]>} : vector<2x8x8xbf16>, vector<2x8x12xbf16>, vector<2x8x12xf32> -> vector<2x8x12xf32>
    "tpu.trace_stop"() : () -> ()
    %c0_7 = arith.constant 0 : index
    %c0_8 = arith.constant 0 : index
    %c0_9 = arith.constant 0 : index
    %c0_10 = arith.constant 0 : index
    %11 = vector.load %arg4[%c0_7, %c0_8, %c0_9, %c0_10] : memref<1x2x1x12xf32, #tpu.memory_space<vmem>>, vector<1x2x1x12xf32>
    %12 = vector.shape_cast %11 : vector<1x2x1x12xf32> to vector<2x1x12xf32>
    %13 = vector.broadcast %12 : vector<2x1x12xf32> to vector<2x8x12xf32>
    %14 = arith.addf %10, %13 : vector<2x8x12xf32>
    %15 = vector.extract_strided_slice %14 {offsets = [0, 0, 0], sizes = [2, 8, 4], strides = [1, 1, 1]} : vector<2x8x12xf32> to vector<2x8x4xf32>
    %cst_11 = arith.constant 5.000000e-01 : f32
    %16 = vector.broadcast %cst_11 : f32 to vector<2x8x4xf32>
    %17 = arith.mulf %15, %16 : vector<2x8x4xf32>
    %18 = arith.truncf %17 : vector<2x8x4xf32> to vector<2x8x4xbf16>
    %19 = vector.extract_strided_slice %14 {offsets = [0, 0, 4], sizes = [2, 8, 4], strides = [1, 1, 1]} : vector<2x8x12xf32> to vector<2x8x4xf32>
    %20 = arith.truncf %19 : vector<2x8x4xf32> to vector<2x8x4xbf16>
    %21 = vector.extract_strided_slice %14 {offsets = [0, 0, 8], sizes = [2, 8, 4], strides = [1, 1, 1]} : vector<2x8x12xf32> to vector<2x8x4xf32>
    %22 = arith.truncf %21 : vector<2x8x4xf32> to vector<2x8x4xbf16>
    "tpu.trace_start"() <{level = 10 : i32, message = "hqd,hkd->hqk"}> : () -> ()
    %cst_12 = arith.constant dense<0.000000e+00> : vector<2x8x8xf32>
    %23 = tpu.matmul %18, %20, %cst_12 {dimension_numbers = #tpu.dot_dimension_numbers<[2], [2], [1], [1], [0, 0, 0, 1, 1, 1], [0], [0]>} : vector<2x8x4xbf16>, vector<2x8x4xbf16>, vector<2x8x8xf32> -> vector<2x8x8xf32>
    "tpu.trace_stop"() : () -> ()
    %cst_13 = arith.constant dense<0xFF800000> : vector<2x8xf32>
    %24 = vector.multi_reduction <maximumf>, %23, %cst_13 [2] : vector<2x8x8xf32> to vector<2x8xf32>
    %25 = vector.shape_cast %24 : vector<2x8xf32> to vector<2x8x1xf32>
    %26 = vector.broadcast %25 : vector<2x8x1xf32> to vector<2x8x8xf32>
    %27 = arith.subf %23, %26 : vector<2x8x8xf32>
    %28 = math.exp %27 : vector<2x8x8xf32>
    %cst_14 = arith.constant dense<0.000000e+00> : vector<2x8xf32>
    %29 = vector.multi_reduction <add>, %28, %cst_14 [2] : vector<2x8x8xf32> to vector<2x8xf32>
    %30 = vector.shape_cast %29 : vector<2x8xf32> to vector<2x8x1xf32>
    %31 = tpu.reciprocal %30 {approx = true} : vector<2x8x1xf32> -> vector<2x8x1xf32>
    %32 = vector.broadcast %31 : vector<2x8x1xf32> to vector<2x8x8xf32>
    %33 = arith.mulf %28, %32 : vector<2x8x8xf32>
    %34 = arith.truncf %33 : vector<2x8x8xf32> to vector<2x8x8xbf16>
    "tpu.trace_start"() <{level = 10 : i32, message = "hqk,hkd->hqd"}> : () -> ()
    %cst_15 = arith.constant dense<0.000000e+00> : vector<2x8x4xf32>
    %35 = tpu.matmul %34, %22, %cst_15 {dimension_numbers = #tpu.dot_dimension_numbers<[2], [1], [1], [2], [0, 0, 0, 1, 1, 2], [0], [0]>} : vector<2x8x8xbf16>, vector<2x8x4xbf16>, vector<2x8x4xf32> -> vector<2x8x4xf32>
    "tpu.trace_stop"() : () -> ()
    %36 = arith.truncf %35 : vector<2x8x4xf32> to vector<2x8x4xbf16>
    %c0_16 = arith.constant 0 : index
    %c0_17 = arith.constant 0 : index
    %c0_18 = arith.constant 0 : index
    %c0_19 = arith.constant 0 : index
    %37 = vector.load %arg5[%c0_16, %c0_17, %c0_18, %c0_19] : memref<1x2x4x8xbf16, #tpu.memory_space<vmem>>, vector<1x2x4x8xbf16>
    %38 = vector.shape_cast %37 : vector<1x2x4x8xbf16> to vector<2x4x8xbf16>
    "tpu.trace_start"() <{level = 10 : i32, message = "hsd,hdf->hsf"}> : () -> ()
    %cst_20 = arith.constant dense<0.000000e+00> : vector<2x8x8xf32>
    %39 = tpu.matmul %36, %38, %cst_20 {dimension_numbers = #tpu.dot_dimension_numbers<[2], [1], [1], [2], [0, 0, 0, 1, 1, 2], [0], [0]>} : vector<2x8x4xbf16>, vector<2x4x8xbf16>, vector<2x8x8xf32> -> vector<2x8x8xf32>
    "tpu.trace_stop"() : () -> ()
    %cst_21 = arith.constant dense<0.000000e+00> : vector<8x8xf32>
    %40 = vector.multi_reduction <add>, %39, %cst_21 [0] : vector<2x8x8xf32> to vector<8x8xf32>
    %c0_22 = arith.constant 0 : index
    %c0_23 = arith.constant 0 : index
    %c0_24 = arith.constant 0 : index
    %41 = vector.load %arg6[%c0_22, %c0_23, %c0_24] : memref<1x1x8xf32, #tpu.memory_space<vmem>>, vector<1x1x8xf32>
    %42 = vector.shape_cast %41 : vector<1x1x8xf32> to vector<1x8xf32>
    %43 = vector.broadcast %42 : vector<1x8xf32> to vector<8x8xf32>
    %44 = arith.addf %40, %43 : vector<8x8xf32>
    %45 = arith.addf %4, %44 : vector<8x8xf32>
    %c0_25 = arith.constant 0 : index
    %c0_26 = arith.constant 0 : index
    %c0_27 = arith.constant 0 : index
    %46 = vector.load %arg7[%c0_25, %c0_26, %c0_27] : memref<1x1x8xf32, #tpu.memory_space<vmem>>, vector<1x1x8xf32>
    %47 = vector.shape_cast %46 : vector<1x1x8xf32> to vector<1x8xf32>
    %c0_28 = arith.constant 0 : index
    %c0_29 = arith.constant 0 : index
    %c0_30 = arith.constant 0 : index
    %48 = vector.load %arg8[%c0_28, %c0_29, %c0_30] : memref<1x1x8xf32, #tpu.memory_space<vmem>>, vector<1x1x8xf32>
    %49 = vector.shape_cast %48 : vector<1x1x8xf32> to vector<1x8xf32>
    %cst_31 = arith.constant dense<0.000000e+00> : vector<8xf32>
    %50 = vector.multi_reduction <add>, %45, %cst_31 [1] : vector<8x8xf32> to vector<8xf32>
    %51 = vector.shape_cast %50 : vector<8xf32> to vector<8x1xf32>
    %cst_32 = arith.constant 8.000000e+00 : f32
    %52 = vector.broadcast %cst_32 : f32 to vector<8x1xf32>
    %53 = arith.divf %51, %52 : vector<8x1xf32>
    %54 = arith.mulf %45, %45 : vector<8x8xf32>
    %cst_33 = arith.constant dense<0.000000e+00> : vector<8xf32>
    %55 = vector.multi_reduction <add>, %54, %cst_33 [1] : vector<8x8xf32> to vector<8xf32>
    %56 = vector.shape_cast %55 : vector<8xf32> to vector<8x1xf32>
    %cst_34 = arith.constant 8.000000e+00 : f32
    %57 = vector.broadcast %cst_34 : f32 to vector<8x1xf32>
    %58 = arith.divf %56, %57 : vector<8x1xf32>
    %59 = arith.mulf %53, %53 : vector<8x1xf32>
    %60 = arith.subf %58, %59 : vector<8x1xf32>
    %61 = vector.broadcast %53 : vector<8x1xf32> to vector<8x8xf32>
    %62 = arith.subf %45, %61 : vector<8x8xf32>
    %cst_35 = arith.constant 9.99999974E-6 : f32
    %63 = vector.broadcast %cst_35 : f32 to vector<8x1xf32>
    %64 = arith.addf %60, %63 : vector<8x1xf32>
    %65 = math.rsqrt %64 : vector<8x1xf32>
    %66 = vector.broadcast %65 : vector<8x1xf32> to vector<8x8xf32>
    %67 = arith.mulf %62, %66 : vector<8x8xf32>
    %68 = vector.broadcast %47 : vector<1x8xf32> to vector<8x8xf32>
    %69 = arith.mulf %67, %68 : vector<8x8xf32>
    %70 = vector.broadcast %49 : vector<1x8xf32> to vector<8x8xf32>
    %71 = arith.addf %69, %70 : vector<8x8xf32>
    %72 = arith.truncf %71 : vector<8x8xf32> to vector<8x8xbf16>
    %c0_36 = arith.constant 0 : index
    %c0_37 = arith.constant 0 : index
    %c0_38 = arith.constant 0 : index
    %73 = vector.load %arg9[%c0_36, %c0_37, %c0_38] : memref<1x8x128xbf16, #tpu.memory_space<vmem>>, vector<1x8x128xbf16>
    %74 = vector.shape_cast %73 : vector<1x8x128xbf16> to vector<8x128xbf16>
    %cst_39 = arith.constant dense<0.000000e+00> : vector<8x128xf32>
    %75 = tpu.matmul %72, %74, %cst_39 {dimension_numbers = #tpu.dot_dimension_numbers<[1], [0], [0], [1], [0, 0, 1, 1], [], []>} : vector<8x8xbf16>, vector<8x128xbf16>, vector<8x128xf32> -> vector<8x128xf32>
    %c0_40 = arith.constant 0 : index
    %c0_41 = arith.constant 0 : index
    %c0_42 = arith.constant 0 : index
    %76 = vector.load %arg10[%c0_40, %c0_41, %c0_42] : memref<1x1x128xf32, #tpu.memory_space<vmem>>, vector<1x1x128xf32>
    %77 = vector.shape_cast %76 : vector<1x1x128xf32> to vector<1x128xf32>
    %78 = vector.broadcast %77 : vector<1x128xf32> to vector<8x128xf32>
    %79 = arith.addf %75, %78 : vector<8x128xf32>
    %cst_43 = arith.constant 0.000000e+00 : f32
    %80 = vector.broadcast %cst_43 : f32 to vector<8x128xf32>
    %81 = arith.maximumf %79, %80 : vector<8x128xf32>
    %82 = arith.truncf %81 : vector<8x128xf32> to vector<8x128xbf16>
    %c0_44 = arith.constant 0 : index
    %c0_45 = arith.constant 0 : index
    %c0_46 = arith.constant 0 : index
    %83 = vector.load %arg11[%c0_44, %c0_45, %c0_46] : memref<1x128x8xbf16, #tpu.memory_space<vmem>>, vector<1x128x8xbf16>
    %84 = vector.shape_cast %83 : vector<1x128x8xbf16> to vector<128x8xbf16>
    %cst_47 = arith.constant dense<0.000000e+00> : vector<8x8xf32>
    %85 = tpu.matmul %82, %84, %cst_47 {dimension_numbers = #tpu.dot_dimension_numbers<[1], [0], [0], [1], [0, 0, 1, 1], [], []>} : vector<8x128xbf16>, vector<128x8xbf16>, vector<8x8xf32> -> vector<8x8xf32>
    %c0_48 = arith.constant 0 : index
    %c0_49 = arith.constant 0 : index
    %c0_50 = arith.constant 0 : index
    %86 = vector.load %arg12[%c0_48, %c0_49, %c0_50] : memref<1x1x8xf32, #tpu.memory_space<vmem>>, vector<1x1x8xf32>
    %87 = vector.shape_cast %86 : vector<1x1x8xf32> to vector<1x8xf32>
    %88 = vector.broadcast %87 : vector<1x8xf32> to vector<8x8xf32>
    %89 = arith.addf %85, %88 : vector<8x8xf32>
    %90 = arith.addf %71, %89 : vector<8x8xf32>
    %c0_51 = arith.constant 0 : index
    %c0_52 = arith.constant 0 : index
    %c0_53 = arith.constant 0 : index
    %91 = vector.load %arg13[%c0_51, %c0_52, %c0_53] : memref<1x1x8xf32, #tpu.memory_space<vmem>>, vector<1x1x8xf32>
    %92 = vector.shape_cast %91 : vector<1x1x8xf32> to vector<1x8xf32>
    %c0_54 = arith.constant 0 : index
    %c0_55 = arith.constant 0 : index
    %c0_56 = arith.constant 0 : index
    %93 = vector.load %arg14[%c0_54, %c0_55, %c0_56] : memref<1x1x8xf32, #tpu.memory_space<vmem>>, vector<1x1x8xf32>
    %94 = vector.shape_cast %93 : vector<1x1x8xf32> to vector<1x8xf32>
    %cst_57 = arith.constant dense<0.000000e+00> : vector<8xf32>
    %95 = vector.multi_reduction <add>, %90, %cst_57 [1] : vector<8x8xf32> to vector<8xf32>
    %96 = vector.shape_cast %95 : vector<8xf32> to vector<8x1xf32>
    %cst_58 = arith.constant 8.000000e+00 : f32
    %97 = vector.broadcast %cst_58 : f32 to vector<8x1xf32>
    %98 = arith.divf %96, %97 : vector<8x1xf32>
    %99 = arith.mulf %90, %90 : vector<8x8xf32>
    %cst_59 = arith.constant dense<0.000000e+00> : vector<8xf32>
    %100 = vector.multi_reduction <add>, %99, %cst_59 [1] : vector<8x8xf32> to vector<8xf32>
    %101 = vector.shape_cast %100 : vector<8xf32> to vector<8x1xf32>
    %cst_60 = arith.constant 8.000000e+00 : f32
    %102 = vector.broadcast %cst_60 : f32 to vector<8x1xf32>
    %103 = arith.divf %101, %102 : vector<8x1xf32>
    %104 = arith.mulf %98, %98 : vector<8x1xf32>
    %105 = arith.subf %103, %104 : vector<8x1xf32>
    %106 = vector.broadcast %98 : vector<8x1xf32> to vector<8x8xf32>
    %107 = arith.subf %90, %106 : vector<8x8xf32>
    %cst_61 = arith.constant 9.99999974E-6 : f32
    %108 = vector.broadcast %cst_61 : f32 to vector<8x1xf32>
    %109 = arith.addf %105, %108 : vector<8x1xf32>
    %110 = math.rsqrt %109 : vector<8x1xf32>
    %111 = vector.broadcast %110 : vector<8x1xf32> to vector<8x8xf32>
    %112 = arith.mulf %107, %111 : vector<8x8xf32>
    %113 = vector.broadcast %92 : vector<1x8xf32> to vector<8x8xf32>
    %114 = arith.mulf %112, %113 : vector<8x8xf32>
    %115 = vector.broadcast %94 : vector<1x8xf32> to vector<8x8xf32>
    %116 = arith.addf %114, %115 : vector<8x8xf32>
    %c0_62 = arith.constant 0 : index
    %c0_63 = arith.constant 0 : index
    %c0_64 = arith.constant 0 : index
    %117 = vector.load %arg15[%c0_62, %c0_63, %c0_64] : memref<1x8x8xf32, #tpu.memory_space<vmem>>, vector<1x8x8xf32>
    %118 = vector.shape_cast %117 : vector<1x8x8xf32> to vector<8x8xf32>
    %119 = vector.shape_cast %116 : vector<8x8xf32> to vector<1x8x8xf32>
    tpu.vector_store %arg15[%c0_62, %c0_63, %c0_64], %119 {strides = array<i32>} : memref<1x8x8xf32, #tpu.memory_space<vmem>>, vector<1x8x8xf32>,
    return
  }
  func.func @transform_0(%arg0: i32, %arg1: i32) -> (i32, i32, i32) {
    %c0_i32 = arith.constant 0 : i32
    %c0_i32_0 = arith.constant 0 : i32
    %c0_i32_1 = arith.constant 0 : i32
    return %arg0, %c0_i32, %c0_i32_0 : i32, i32, i32
  }
  func.func @transform_1(%arg0: i32, %arg1: i32) -> (i32, i32, i32, i32) {
    %c0_i32 = arith.constant 0 : i32
    %c0_i32_0 = arith.constant 0 : i32
    %c0_i32_1 = arith.constant 0 : i32
    %c0_i32_2 = arith.constant 0 : i32
    return %arg1, %c0_i32, %c0_i32_0, %c0_i32_1 : i32, i32, i32, i32
  }
  func.func @transform_2(%arg0: i32, %arg1: i32) -> (i32, i32, i32, i32) {
    %c0_i32 = arith.constant 0 : i32
    %c0_i32_0 = arith.constant 0 : i32
    %c0_i32_1 = arith.constant 0 : i32
    %c0_i32_2 = arith.constant 0 : i32
    return %arg1, %c0_i32, %c0_i32_0, %c0_i32_1 : i32, i32, i32, i32
  }
  func.func @transform_3(%arg0: i32, %arg1: i32) -> (i32, i32, i32, i32) {
    %c0_i32 = arith.constant 0 : i32
    %c0_i32_0 = arith.constant 0 : i32
    %c0_i32_1 = arith.constant 0 : i32
    %c0_i32_2 = arith.constant 0 : i32
    return %arg1, %c0_i32, %c0_i32_0, %c0_i32_1 : i32, i32, i32, i32
  }
  func.func @transform_4(%arg0: i32, %arg1: i32) -> (i32, i32, i32) {
    %c0_i32 = arith.constant 0 : i32
    %c0_i32_0 = arith.constant 0 : i32
    %c0_i32_1 = arith.constant 0 : i32
    return %arg1, %c0_i32, %c0_i32_0 : i32, i32, i32
  }
  func.func @transform_5(%arg0: i32, %arg1: i32) -> (i32, i32, i32) {
    %c0_i32 = arith.constant 0 : i32
    %c0_i32_0 = arith.constant 0 : i32
    %c0_i32_1 = arith.constant 0 : i32
    return %arg1, %c0_i32, %c0_i32_0 : i32, i32, i32
  }
  func.func @transform_6(%arg0: i32, %arg1: i32) -> (i32, i32, i32) {
    %c0_i32 = arith.constant 0 : i32
    %c0_i32_0 = arith.constant 0 : i32
    %c0_i32_1 = arith.constant 0 : i32
    return %arg1, %c0_i32, %c0_i32_0 : i32, i32, i32
  }
  func.func @transform_7(%arg0: i32, %arg1: i32) -> (i32, i32, i32) {
    %c0_i32 = arith.constant 0 : i32
    %c0_i32_0 = arith.constant 0 : i32
    %c0_i32_1 = arith.constant 0 : i32
    return %arg1, %c0_i32, %c0_i32_0 : i32, i32, i32
  }
  func.func @transform_8(%arg0: i32, %arg1: i32) -> (i32, i32, i32) {
    %c0_i32 = arith.constant 0 : i32
    %c0_i32_0 = arith.constant 0 : i32
    %c0_i32_1 = arith.constant 0 : i32
    return %arg1, %c0_i32, %c0_i32_0 : i32, i32, i32
  }
  func.func @transform_9(%arg0: i32, %arg1: i32) -> (i32, i32, i32) {
    %c0_i32 = arith.constant 0 : i32
    %c0_i32_0 = arith.constant 0 : i32
    %c0_i32_1 = arith.constant 0 : i32
    return %arg1, %c0_i32, %c0_i32_0 : i32, i32, i32
  }
  func.func @transform_10(%arg0: i32, %arg1: i32) -> (i32, i32, i32) {
    %c0_i32 = arith.constant 0 : i32
    %c0_i32_0 = arith.constant 0 : i32
    %c0_i32_1 = arith.constant 0 : i32
    return %arg1, %c0_i32, %c0_i32_0 : i32, i32, i32
  }
  func.func @transform_11(%arg0: i32, %arg1: i32) -> (i32, i32, i32) {
    %c0_i32 = arith.constant 0 : i32
    %c0_i32_0 = arith.constant 0 : i32
    %c0_i32_1 = arith.constant 0 : i32
    return %arg1, %c0_i32, %c0_i32_0 : i32, i32, i32
  }
  func.func @transform_12(%arg0: i32, %arg1: i32) -> (i32, i32, i32) {
    %c0_i32 = arith.constant 0 : i32
    %c0_i32_0 = arith.constant 0 : i32
    %c0_i32_1 = arith.constant 0 : i32
    return %arg1, %c0_i32, %c0_i32_0 : i32, i32, i32
  }
  func.func @transform_13(%arg0: i32, %arg1: i32) -> (i32, i32, i32) {
    %c0_i32 = arith.constant 0 : i32
    %c0_i32_0 = arith.constant 0 : i32
    %c0_i32_1 = arith.constant 0 : i32
    return %arg0, %c0_i32, %c0_i32_0 : i32, i32, i32
  }
}

</mosaic_0001>

<bundles_post_ra>
// kernel: tpu_custom_call.1
= control target key start
LH: loop header
LB: loop body
LE: loop exit
PB: predicated region body
PF: predicated region fallthrough
CT: control target
= control target key end

     0   :  { %s2395_s0 = inlined_call_operand.hbm [shape: f32[2,8,8], index: 0, kind: input, shape index: {}, may-alias: {0,13}]   ;;  %s2396_s1 = inlined_call_operand.vmem [shape: bf16[2,2,8,12], index: 1, kind: input, shape index: {}]   ;;  %s2397_s2 = inlined_call_operand.vmem [shape: f32[2,2,1,12], index: 2, kind: input, shape index: {}]   ;;  %s2398_s3 = inlined_call_operand.vmem [shape: bf16[2,2,4,8], index: 3, kind: input, shape index: {}]   ;;  %s2399_s4 = inlined_call_operand.vmem [shape: f32[2,1,8], index: 4, kind: input, shape index: {}]   ;;  %s2400_s5 = inlined_call_operand.vmem [shape: f32[2,1,8], index: 5, kind: input, shape index: {}]   ;;  %s2401_s6 = inlined_call_operand.vmem [shape: f32[2,1,8], index: 6, kind: input, shape index: {}]   ;;  %s2402_s7 = inlined_call_operand.vmem [shape: bf16[2,8,128], index: 7, kind: input, shape index: {}]   ;;  %s2403_s8 = inlined_call_operand.vmem [shape: f32[2,1,128], index: 8, kind: input, shape index: {}]   ;;  %s2404_s9 = inlined_call_operand.vmem [shape: bf16[2,128,8], index: 9, kind: input, shape index: {}]   ;;  %s2405_s10 = inlined_call_operand.vmem [shape: f32[2,1,8], index: 10, kind: input, shape index: {}]   ;;  %s2406_s11 = inlined_call_operand.vmem [shape: f32[2,1,8], index: 11, kind: input, shape index: {}]   ;;  %s2407_s12 = inlined_call_operand.vmem [shape: f32[2,1,8], index: 12, kind: input, shape index: {}]   ;;  %s2408_s13 = inlined_call_operand.hbm [shape: f32[2,8,8], index: 13, kind: output, shape index: {}, may-alias: {0,13}]  }
   0x1   :  { %2424 = sst [smem:[#allocation22_spill]] %s2395_s0 }
   0x2   :  { %2425 = sst [smem:[#allocation23_spill]] %s2396_s1 }
   0x3   :  { %2426 = sst [smem:[#allocation24_spill]] %s2397_s2 }
   0x4   :  { %2427 = sst [smem:[#allocation25_spill]] %s2398_s3 }
   0x5   :  { %2428 = sst [smem:[#allocation26_spill]] %s2402_s7 }
   0x6   :  { %2429 = sst [smem:[#allocation27_spill]] %s2407_s12 }
   0x7   :  { %2430 = sst [smem:[#allocation28_spill]] %s2408_s13 }
   0x8   :  { %18 = vsyncpa [#allocation3], 0 }
   0x9   :  { %20 = vsyncpa [#allocation3 + $0x1], 0 }
   0xa   :  { %21 = vsyncpa [#allocation4], 0 }
   0xb   :  { %23 = vsyncpa [#allocation4 + $0x1], 0  ;;  %s2022_s25 = smov 0   ;;  %s2024_s26 = smov 0  }
   0xc   :  { %s2026_s27 = smov 0   ;;  %s2028_s28 = smov 0  }
   0xd   :  { %s2030_s29 = smov 0   ;;  %s2032_s30 = smov 0  }
   0xe   :  { %s2034_s14 = smov 0   ;;  %s2036_s15 = smov 0  }
   0xf LB: > { %2431 = sst [smem:[#allocation8_spill]] %s1916_s25  ;;  %s1562_s16 = sadd.s32 4294967295, %s1944_s15   ;;  %s1944_s15 = sphi %s2036_s15, %s29_s15   ;;  %s1940_s14 = sphi %s2034_s14, %s2478_s14   ;;  %s1936_s30 = sphi %s2032_s30, %s2477_s30   ;;  %s1932_s29 = sphi %s2030_s29, %s2476_s29   ;;  %s1928_s28 = sphi %s2028_s28, %s2475_s28   ;;  %s1924_s27 = sphi %s2026_s27, %s2474_s27   ;;  %s1920_s26 = sphi %s2024_s26, %s2473_s26   ;;  %s1916_s25 = sphi %s2022_s25, %s2472_s25  }
  0x10   : > { %2432 = sst [smem:[#allocation9_spill]] %s1920_s26  ;;  %s1563_s17 = sadd.s32 4294967294, %s1944_s15  }
  0x11   : > { %2433 = sst [smem:[#allocation10_spill]] %s1924_s27  ;;  %s38_s18 = sadd.s32 1, %s1936_s30 }
  0x12   : > { %2434 = sst [smem:[#allocation11_spill]] %s1928_s28  ;;  %s41_s19 = sadd.s32 1, %s1940_s14 }
  0x13   : > { %2435 = sst [smem:[#allocation12_spill]] %s1932_s29  ;;  %p39_p0 = scmp.ge.s32.totalorder %s38_s18, 2 }
  0x14   : > { %2436 = sst [smem:[#allocation13_spill]] %s1936_s30  ;;  %s48_s20 = sadd.s32 1, %s1924_s27 }
  0x15   : > { %2437 = sst [smem:[#allocation14_spill]] %s1940_s14  ;;  %p55_p1 = scmp.ne.s32.totalorder %s1924_s27, %s1920_s26 }
  0x16   : > { %2438 = sst [smem:[#allocation15_spill]] %s1944_s15  ;;  %p56_p2 = scmp.eq.s32.totalorder %s1944_s15, 0 }
  0x17   : > { %s2480_s18 = smov (%p39_p0, %s38_s18), 0  ;;  %s2482_s19 = smov (!%p39_p0, %s41_s19), %s1940_s14 }
  0x18   : > { %2439 = sst [smem:[#allocation16_spill]] %s2480_s18  ;;  %p2073_p3 = por %p56_p2, %p55_p1 }
  0x19   : > { %p61_p4 = scmp.ne.s32.totalorder %s1920_s26, %s1916_s25  ;;  %p43_p5 = scmp.ge.s32.totalorder %s2482_s19, 2 }
  0x1a   : > { %p62_p6 = scmp.eq.s32.totalorder %s1562_s16, 0  ;;  %p397_p7 = scmp.eq.s32.totalorder %s1562_s16, 3 }
  0x1b   : > { %p403_p8 = scmp.eq.s32.totalorder %s1563_s17, 3  ;;  %s2484_s19 = smov (%p43_p5, %s2482_s19), 0 }
  0x1c   : > { %2441 = sst [smem:[#allocation17_spill]] %s2484_s19  ;;  %p2081_p9 = por %p62_p6, %p61_p4 }
  0x1d   : > { %p2085_p10 = por %p397_p7, %p55_p1  ;;  %s45_s24 = ssub.s32 %s1940_s14, %s2484_s19 }
  0x1e   : > { %p2091_p11 = por %p403_p8, %p61_p4  ;;  %p46_p12 = scmp.eq.s32.totalorder %s45_s24, 0 }
  0x1f   : > { %s2443_s23 = scalar_select %p2085_p10, 1, 0 }
  0x20   : > { %s2445_s18 = scalar_select %p2091_p11, 1, 0 }
  0x21   : > { %2444 = sst [smem:[#allocation18_spill]] %s2443_s23  ;;  %p1726_p13 = scmp.lt.s32.totalorder %s1944_s15, 4 }
  0x22   : > { %2446 = sst [smem:[#allocation19_spill]] %s2445_s18  ;;  %s423_s16 = sand.u32 1, %s1924_s27  }
  0x23   : > { %s2098_s17 = scalar_select %p46_p12, %s1924_s27, %s48_s20  }
  0x24   : > { %s1566_s30 = sshll.u32 %s423_s16, 3  ;;  %s1567_s25 = sshll.u32 %s1940_s14, 7 }
  0x25   : > { %2447 = sst [smem:[#allocation20_spill]] %s2098_s17  ;;  %s2448_s0 = sld [smem:[#allocation22_spill]] }
  0x26   : > { %s427_s19 = scalar_lea.vmem [#allocation2], %s1566_s30  ;;  %p2110_p0 = pnand %p1726_p13, %p2073_p3 }
  0x27   : > { %s434_s23 = sshll.u32 %s427_s19, 4  ;;  %s424_s13 = scalar_lea.sflag [#allocation3], %s423_s16  ;;  %s2106_s23 = int_to_ptr.vmem [resolvable:$true] %s434_s23 }
  0x28   : > { %p1818_p5 = pneg %p2110_p0 }
  0x2b   : > { %s2104_s12 = scalar_lea.hbm %s2448_s0, %s1567_s25  ;;  %s1821_s19 = scalar_lea.hbm %s2448_s0, 256 }
  0x2c   : > { %s1816_s25 = scalar_lea.hbm %s2104_s12, 128  ;;  %p1822_p3 = scmp.lt.u32.totalorder %s2104_s12, %s2448_s0 }
  0x2d   : > { %p1817_p4 = scmp.ne.s32.totalorder %s2104_s12, %s1816_s25  ;;  %p1823_p8 = scmp.lt.u32.totalorder %s1821_s19, %s1816_s25 }
  0x2e   : > { %p1825_p13 = scmp.lt.u32.totalorder %s1816_s25, %s2104_s12 }
  0x2f   : > { %p1819_p6 = pnand %p1818_p5, %p1817_p4  ;;  %p1824_p12 = por %p1823_p8, %p1822_p3 }
  0x31   : > { %p1820_p7 = pneg %p1819_p6  ;;  %p1826_p1 = por %p1825_p13, %p1824_p12 }
  0x33   : > { %p1827_p2 = pnand %p1826_p1, %p1820_p7 }
  0x35   : > { %1830 = shalt.err (!%p1827_p2)
}
  0x36   : > { %s1831_s16 = scalar_lea.vmem %s2106_s23, 128  ;;  %s1946_s29 = smov [#allocation2]  }
  0x37   : > { %p1832_p4 = scmp.ne.s32.totalorder %s2106_s23, %s1831_s16  ;;  %s1836_s30 = sshll.u32 %s1946_s29, 4  ;;  %s1837_s30 = int_to_ptr.vmem [resolvable:$false] %s1836_s30 }
  0x38   : > { %s1838_s20 = scalar_lea.vmem %s1837_s30, 256  ;;  %p1839_p10 = scmp.lt.s32.totalorder %s2106_s23, %s1837_s30 }
  0x39   : > { %p1834_p6 = pnand %p1832_p4, %p1818_p5  ;;  %p1840_p3 = scmp.lt.s32.totalorder %s1838_s20, %s1831_s16 }
  0x3b   : > { %p1835_p11 = pneg %p1834_p6  ;;  %p1841_p8 = por %p1840_p3, %p1839_p10 }
  0x3d   : > { %p1842_p12 = pnand %p1841_p8, %p1835_p11 }
  0x3f   : > { %1845 = shalt.err (!%p1842_p12)
}
  0x40   : > { %1721 = dma.hbm_to_vmem [thread:$0]  (!%p2110_p0), %s2104_s12, 128, %s2106_s23, %s424_s13  }
  0x41   : > { %p2450_p1 = scmp.lt.s32.totalorder %s1944_s15, 5  ;;  %p2451_p2 = scmp.ge.s32.totalorder %s1944_s15, 1 }
  0x43   : > { %p520_p5 = pnand %p2451_p2, %p2450_p1 }
  0x45   : > { %523 = sbr.rel (%p520_p5) target bundleno = 2207 (0x89f), region = 72 }
  0x4c   : > { %s2146_s25 = sand.u32 1, %s1920_s26  }
  0x4d   : > { %2452 = sst [smem:[#allocation21_spill]] %s2146_s25  ;;  %s1569_s19 = sshll.u32 %s2146_s25, 3 }
  0x4e   : > { %s526_s21 = scalar_lea.sflag [#allocation3], %s2146_s25  ;;  %s529_s16 = scalar_lea.vmem [#allocation2], %s1569_s19 }
  0x4f   : > { %1907 = dma.done.wait (%p2081_p9), %s526_s21, 128  }
  0x50   : > { %1909 = vsyncadd (%p2081_p9), %s526_s21, 4294967168  ;;  %p616_p10 = scmp.lt.s32.totalorder %s1928_s28, 1  ;;  %s2453_s1 = sld [smem:[#allocation23_spill]] }
  0x51   : > { %s2454_s2 = sld [smem:[#allocation24_spill]]  ;;  %s2455_s3 = sld [smem:[#allocation25_spill]] }
  0x52   : > { %s2156_s12 = scalar_select %p616_p10, %s1928_s28, 1 }
  0x53   : > { %s2456_s7 = sld [smem:[#allocation26_spill]]  ;;  %s2457_s22 = sld [smem:[#allocation27_spill]] }
  0x54   : > { %s1610_s23 = sshll.u32 %s2156_s12, 3  ;;  %s1573_s24 = sshll.u32 %s2156_s12, 1 }
  0x55   : > { %s1611_s0 = sshll.u32 %s2156_s12, 2  ;;  %s645_s27 = scalar_lea.vmem %s2403_s8, %s2156_s12 }
  0x56   : > { %s620_s29 = scalar_lea.vmem %s2453_s1, %s1610_s23  ;;  %s1612_s26 = sshll.u32 %s2156_s12, 6 }
  0x57   : > { %s2166_s21 = scalar_lea.vmem %s2454_s2, %s1573_s24  ;;  %s2176_s15 = scalar_lea.vmem %s2455_s3, %s1611_s0 }
  0x58   : > { %s2199_s3 = scalar_lea.vmem %s2404_s9, %s1612_s26  ;;  %s653_s23 = scalar_lea.vmem %s2405_s10, %s2156_s12 }
  0x59   : > { %s2189_s1 = scalar_lea.vmem %s2456_s7, %s1611_s0  ;;  %s656_s24 = scalar_lea.vmem %s2406_s11, %s2156_s12 }
  0x5a   : > { %s659_s7 = scalar_lea.vmem %s2457_s22, %s2156_s12  ;;  %s2213_s14 = scalar_lea.vmem [#allocation5], %s1569_s19 }
  0x5b   : > { %s2458_s17 = sld [smem:[#allocation11_spill]] }
  0x61   : > { %p1579_p9 = scmp.ne.s32.totalorder %s2458_s17, 0 }
  0x62   : > { %v665_v0 = vld [vmem:[%s529_s16] sm:$0xff] (!%p1579_p9)  ;;  %vm666_vm0 = vcmask (!%p1579_p9), 64512  }
  0x63   : > { %664 = sbr.rel (%p1579_p9) target bundleno = 106 (0x6a), region = 80  ;;  %667 = vst.msk [vmem:[%s2213_s14] sm:$0xff] (!%p1579_p9), %vm666_vm0, %v665_v0 }
  0x6a PF: > { %v670_v1 = vld [vmem:[%s620_s29] sm:$0xf]  ;;  %vm690_vm1 = vcmask 1043456   ;;  %v2218_v2 = vld [vmem:[%s2213_s14] sm:$0xff]  ;;  %v1947_v3 = vmov 0.0   ;;  %vm1948_vm2 = vmmov 0   ;;  %s2460_s22 = scalar_lea.vmem %s2400_s5, %s2156_s12  ;;  %s2461_s18 = scalar_lea.vmem %s2401_s6, %s2156_s12 }
  0x6b   : > { %1640 = vmatprep.subr.bf16.mxu0 %v1947_v3  ;;  %v692_v4 = vsel %vm690_vm1, %v670_v1, 0  ;;  %1642 = vmatprep.mubr.msk.bf16.mxu0 %vm1948_vm2, %v1947_v3  ;;  %v669_v5 = vpack.c.bf16 %v2218_v2, %v2218_v2  ;;  %v671_v6 = vld [vmem:[%s620_s29 + $0x4] sm:$0xf]  ;;  %vm686_vm3 = vcmask 64512   ;;  %v1580_v8 = vld [vmem:[%s2166_s21] ss:$0 sm:$0xff]  ;;  %s2459_s29 = scalar_lea.vmem %s2399_s4, %s2156_s12 }
  0x6c   : > { %1641 = vmatpush3.bf16.msra.mxu0 %v692_v4  ;;  %1646 = vmatprep.subr.bf16.mxu1 %v1947_v3  ;;  %v735_v7 = vsel %vm690_vm1, %v671_v6, 0  ;;  %v1581_v9 = vld [vmem:[%s2166_s21 + $0x1] ss:$0 sm:$0xff]  ;;  %s1949_s2 = smov 124   ;;  %vm786_vm4 = vcmask 31744   ;;  %s1950_s19 = smov 120  }
  0x6d   : > { %1647 = vmatpush3.bf16.msra.mxu1 %v735_v7  ;;  %1648 = vmatprep.mubr.msk.bf16.mxu1 %vm1948_vm2, %v1947_v3  ;;  %v1004_v62 = vld [vmem:[%s2176_s15] sm:$0x3]  ;;  %vm1009_vm5 = vcmask 1041408   ;;  %v1005_v0 = vld [vmem:[%s2176_s15 + $0x2] sm:$0x3] }
  0x6e   : > { %1652 = vmatprep.subr.bf16.mxu0 %v1947_v3  ;;  %1670 = vmatprep.subr.bf16.mxu1 %v1947_v3  ;;  %v1011_v63 = vsel %vm1009_vm5, %v1004_v62, 0  ;;  %v1057_v1 = vsel %vm1009_vm5, %v1005_v0, 0 }
  0x6f   : > { %1643 = vmatmul.mubr.msk.bf16.vlgmr.msra.gmra.mrb[0].mxu0 %vm686_vm3, %v669_v5 }
  0x70   : > { %1649 = vmatmul.mubr.msk.bf16.vlgmr.msra.gmra.mrb[0].mxu1 %vm686_vm3, %v669_v5  ;;  %1654 = vmatprep.mubr.msk.bf16.mxu0 %vm1948_vm2, %v1947_v3 }
  0x71   : > { %1672 = vmatprep.mubr.msk.bf16.mxu1 %vm1948_vm2, %v1947_v3 }
 0x142   : > { %v728_v10 = vpop.f32.mrb[0].mxu0 }
 0x143   : > { %v729_v11 = vadd.f32 %v1580_v8, %v728_v10  ;;  %v1644_v12 = vpop.f32.mrb[1].mxu0  ;;  %v771_v13 = vpop.f32.mrb[0].mxu1 }
 0x144   : > { %v731_v14 = vpop.f32.mrb[2].mxu0  ;;  %v772_v15 = vadd.f32 %v1581_v9, %v771_v13  ;;  %v1650_v16 = vpop.f32.mrb[1].mxu1 }
 0x145   : > { %v1645_v17 = vpop.f32.mrb[3].mxu0  ;;  %v781_v18 = vpack.c.bf16 %v729_v11, %v729_v11  ;;  %v774_v19 = vpop.f32.mrb[2].mxu1  ;;  %v777_v24 = vmul.f32 0.5, %v729_v11 }
 0x146   : > { %v1651_v20 = vpop.f32.mrb[3].mxu1  ;;  %v782_v21 = vpack.c.bf16 %v772_v15, %v772_v15  ;;  %v778_v28 = vmul.f32 0.5, %v772_v15 }
 0x147   : > { %784 = vrot.lane.b32.xlu0 %v781_v18, %s1949_s2  ;;  %v779_v26 = vpack.c.bf16 %v777_v24, %v777_v24 }
 0x148   : > { %v780_v29 = vpack.c.bf16 %v778_v28, %v778_v28 }
 0x14b   : > { %834 = vrot.lane.b32.xlu0 %v782_v21, %s1949_s2 }
 0x1b9   : > { %v785_v22 = vpop.permute.xlu0 %784 }
 0x1ba   : > { %v791_v23 = vsel %vm786_vm4, %v785_v22, 0 }
 0x1bb   : > { %1653 = vmatpush3.bf16.xpose.msra.mxu0 %v791_v23 }
 0x1bc   : > { %1658 = vmatprep.subr.bf16.mxu0 %v1947_v3 }
 0x1bd   : > { %v835_v25 = vpop.permute.xlu0 %834 }
 0x1be   : > { %v840_v27 = vsel %vm786_vm4, %v835_v25, 0 }
 0x1c2   : > { %1655 = vmatmul.mubr.msk.bf16.vlgmr.msra.gmra.mrb[4].mxu0 %vm786_vm4, %v779_v26 }
 0x1c3   : > { %1659 = vmatpush3.bf16.xpose.msra.mxu0 %v840_v27  ;;  %1660 = vmatprep.mubr.msk.bf16.mxu0 %vm1948_vm2, %v1947_v3 }
 0x1c4   : > { %1664 = vmatprep.subr.bf16.mxu0 %v1947_v3 }
 0x1ca   : > { %1661 = vmatmul.mubr.msk.bf16.vlgmr.msra.gmra.mrb[8].mxu0 %vm786_vm4, %v780_v29 }
 0x1cb   : > { %1666 = vmatprep.mubr.msk.bf16.mxu0 %vm1948_vm2, %v1947_v3 }
 0x295   : > { %v827_v30 = vpop.f32.mrb[4].mxu0 }
 0x296   : > { %v1656_v31 = vpop.f32.mrb[5].mxu0  ;;  %v882_v32 = vsel %vm686_vm3, %v827_v30, -inf }
 0x297   : > { %883 = vmax.xlane.f32.xlu1 %v882_v32  ;;  %v830_v33 = vpop.f32.mrb[6].mxu0  ;;  %v1144_v31 = vld [vmem:[%s2189_s1] sm:$0xf] }
 0x298   : > { %v1657_v34 = vpop.f32.mrb[7].mxu0  ;;  %v1156_v32 = vsel %vm690_vm1, %v1144_v31, 0  ;;  %v1796_v33 = vld [vmem:[%s2199_s3] sm:$0xff]  }
 0x299   : > { %v1797_v34 = vld [vmem:[%s2199_s3 + $0x8] sm:$0xff]  }
 0x29d   : > { %v876_v35 = vpop.f32.mrb[8].mxu0 }
 0x29e   : > { %v1662_v36 = vpop.f32.mrb[9].mxu0  ;;  %v885_v37 = vsel %vm686_vm3, %v876_v35, -inf }
 0x29f   : > { %886 = vmax.xlane.f32.xlu1 %v885_v37  ;;  %v879_v38 = vpop.f32.mrb[10].mxu0  ;;  %v1800_v36 = vld [vmem:[%s2199_s3 + $0x20] sm:$0xff]   ;;  %v1801_v37 = vld [vmem:[%s2199_s3 + $0x28] sm:$0xff]  }
 0x2a0   : > { %v1663_v39 = vpop.f32.mrb[11].mxu0 }
 0x2b0   : > { %906 = vrot.lane.b32.xlu1 %v781_v18, %s1950_s19 }
 0x324   : > { %v884_v40 = vpop.xlane.xlu1 %883 }
 0x325   : > { %v888_v41 = vsub.f32 %v827_v30, %v884_v40 }
 0x327   : > { %v890_v42 = vmul.f32 1.442695, %v888_v41 }
 0x329   : > { %1804 = vpow2.f32 %v890_v42 }
 0x32c   : > { %v887_v43 = vpop.xlane.xlu1 %886 }
 0x32d   : > { %v889_v44 = vsub.f32 %v876_v35, %v887_v43  ;;  %v1799_v35 = vld [vmem:[%s2199_s3 + $0x18] sm:$0xff]  }
 0x32f   : > { %v892_v45 = vmul.f32 1.442695, %v889_v44 }
 0x330   : > { %v907_v46 = vpop.permute.xlu1 %906 }
 0x331   : > { %1806 = vpow2.f32 %v892_v45  ;;  %v912_v47 = vsel %vm690_vm1, %v907_v46, 0 }
 0x332   : > { %1665 = vmatpush3.bf16.msra.mxu0 %v912_v47  ;;  %v1591_v47 = vld [vmem:[%s2460_s22] ss:$0 sm:$0xff]  ;;  %s2466_s22 = sld [smem:[#allocation28_spill]] }
 0x333   : > { %v1805_v48 = vpop.eup %1804  ;;  %1676 = vmatprep.subr.bf16.mxu0 %v1947_v3 }
 0x334   : > { %v894_v49 = vsel %vm686_vm3, %v1805_v48, 0.0 }
 0x335   : > { %895 = vadd.xlane.f32.xlu0 %v894_v49  ;;  %v1592_v49 = vld [vmem:[%s2461_s18] ss:$0 sm:$0xff] }
 0x33b   : > { %v1807_v50 = vpop.eup %1806 }
 0x33c   : > { %v897_v51 = vsel %vm686_vm3, %v1807_v50, 0.0 }
 0x33d   : > { %898 = vadd.xlane.f32.xlu1 %v897_v51 }
 0x34e   : > { %954 = vrot.lane.b32.xlu1 %v782_v21, %s1950_s19  ;;  %v1590_v21 = vld [vmem:[%s2459_s29] ss:$0 sm:$0xff]  ;;  %s1358_s29 = sshll.u32 %s2213_s14, 4  ;;  %s2341_s29 = int_to_ptr.vmem [resolvable:$true] %s1358_s29 }
 0x34f   : > { %s1846_s26 = scalar_lea.vmem %s2341_s29, 128 }
 0x350   : > { %p1847_p11 = scmp.ne.s32.totalorder %s2341_s29, %s1846_s26 }
 0x3c2   : > { %v896_v52 = vpop.xlane.xlu0 %895 }
 0x3c3   : > { %1808 = vrcp.f32 %v896_v52 }
 0x3ca   : > { %v899_v53 = vpop.xlane.xlu1 %898 }
 0x3cb   : > { %1810 = vrcp.f32 %v899_v53  ;;  %v1802_v53 = vld [vmem:[%s2199_s3 + $0x30] sm:$0xff]  }
 0x3cd   : > { %v1809_v54 = vpop.eup %1808 }
 0x3ce   : > { %v902_v55 = vmul.f32 %v1809_v54, %v1805_v48  ;;  %v955_v56 = vpop.permute.xlu1 %954  ;;  %v1803_v54 = vld [vmem:[%s2199_s3 + $0x38] sm:$0xff]  }
 0x3cf   : > { %v960_v57 = vsel %vm690_vm1, %v955_v56, 0 }
 0x3d0   : > { %1671 = vmatpush3.bf16.msra.mxu1 %v960_v57  ;;  %v904_v58 = vpack.c.bf16 %v902_v55, %v902_v55  ;;  %v1593_v55 = vld [vmem:[%s645_s27] ss:$0 sm:$0xff]  ;;  %s2463_s27 = sld [smem:[#allocation21_spill]] }
 0x3d1   : > { %1682 = vmatprep.subr.bf16.mxu1 %v1947_v3 }
 0x3d2   : > { %1667 = vmatmul.mubr.msk.bf16.vlgmr.msra.gmra.mrb[12].mxu0 %vm686_vm3, %v904_v58 }
 0x3d3   : > { %1678 = vmatprep.mubr.msk.bf16.mxu0 %vm1948_vm2, %v1947_v3  ;;  %1677 = vmatpush3.bf16.msra.mxu0 %v1011_v63 }
 0x3d4   : > { %1688 = vmatprep.subr.bf16.mxu0 %v1947_v3 }
 0x3d5   : > { %v1811_v59 = vpop.eup %1810 }
 0x3d6   : > { %v903_v60 = vmul.f32 %v1811_v59, %v1807_v50 }
 0x3d8   : > { %v905_v61 = vpack.c.bf16 %v903_v60, %v903_v60 }
 0x3da   : > { %1673 = vmatmul.mubr.msk.bf16.vlgmr.msra.gmra.mrb[4].mxu1 %vm686_vm3, %v905_v61 }
 0x3db   : > { %1684 = vmatprep.mubr.msk.bf16.mxu1 %vm1948_vm2, %v1947_v3  ;;  %1683 = vmatpush3.bf16.msra.mxu1 %v1057_v1 }
 0x3dc   : > { %1694 = vmatprep.subr.bf16.mxu1 %v1947_v3 }
 0x4a5   : > { %v948_v4 = vpop.f32.mrb[12].mxu0 }
 0x4a6   : > { %v1002_v5 = vpack.c.bf16 %v948_v4, %v948_v4  ;;  %v1668_v6 = vpop.f32.mrb[13].mxu0 }
 0x4a7   : > { %v951_v7 = vpop.f32.mrb[14].mxu0 }
 0x4a8   : > { %v1669_v8 = vpop.f32.mrb[15].mxu0  ;;  %1679 = vmatmul.mubr.msk.bf16.vlgmr.msra.gmra.mrb[16].mxu0 %vm786_vm4, %v1002_v5 }
 0x4a9   : > { %1690 = vmatprep.mubr.msk.bf16.mxu0 %vm1948_vm2, %v1947_v3  ;;  %1689 = vmatpush3.bf16.msra.mxu0 %v1156_v32 }
 0x4ad   : > { %v996_v9 = vpop.f32.mrb[4].mxu1 }
 0x4ae   : > { %v1003_v10 = vpack.c.bf16 %v996_v9, %v996_v9  ;;  %v1674_v11 = vpop.f32.mrb[5].mxu1 }
 0x4af   : > { %v999_v12 = vpop.f32.mrb[6].mxu1 }
 0x4b0   : > { %v1675_v13 = vpop.f32.mrb[7].mxu1  ;;  %1685 = vmatmul.mubr.msk.bf16.vlgmr.msra.gmra.mrb[8].mxu1 %vm786_vm4, %v1003_v10 }
 0x4b1   : > { %1710 = vmatprep.mubr.msk.bf16.mxu1 %vm1948_vm2, %v1947_v3  ;;  %1695 = vmatpush3.bf16.msra.mxu1 %v1796_v33 }
 0x4b2   : > { %1696 = vmatprep.subr.bf16.mxu1 %v1947_v3 }
 0x4b5   : > { %1697 = vmatpush3.bf16.msra.mxu1 %v1797_v34 }
 0x4b6   : > { %1698 = vmatprep.subr.bf16.mxu1 %v1947_v3 }
 0x57b   : > { %v1047_v14 = vpop.f32.mrb[16].mxu0 }
 0x57c   : > { %v1680_v15 = vpop.f32.mrb[17].mxu0  ;;  %v1099_v19 = vsel %vm686_vm3, %v1047_v14, 0.0 }
 0x57d   : > { %v1050_v16 = vpop.f32.mrb[18].mxu0 }
 0x57e   : > { %v1681_v17 = vpop.f32.mrb[19].mxu0 }
 0x583   : > { %v1093_v18 = vpop.f32.mrb[8].mxu1 }
 0x584   : > { %v1100_v20 = vsel %vm686_vm3, %v1093_v18, 0.0  ;;  %v1686_v22 = vpop.f32.mrb[9].mxu1 }
 0x585   : > { %v1101_v23 = vadd.f32 %v1100_v20, %v1099_v19  ;;  %v1096_v24 = vpop.f32.mrb[10].mxu1  ;;  %v1604_v19 = vld [vmem:[%s656_s24] ss:$0 sm:$0xff]  ;;  %s1345_s24 = scalar_lea.sflag [#allocation4], %s2463_s27 }
 0x586   : > { %v1687_v25 = vpop.f32.mrb[11].mxu1 }
 0x587   : > { %v1109_v26 = vadd.f32 %v1590_v21, %v1101_v23  ;;  %v1605_v21 = vld [vmem:[%s659_s7] ss:$0 sm:$0xff]  ;;  %s1951_s7 = smov [#allocation5]  }
 0x588   : > { %s1850_s12 = sshll.u32 %s1951_s7, 4  ;;  %s1851_s12 = int_to_ptr.vmem [resolvable:$false] %s1850_s12 }
 0x589   : > { %v1110_v27 = vadd.f32 %v1109_v26, %v2218_v2  ;;  %v1798_v2 = vld [vmem:[%s2199_s3 + $0x10] sm:$0xff]   ;;  %s2462_s3 = sld [smem:[#allocation12_spill]]  ;;  %s1852_s18 = scalar_lea.vmem %s1851_s12, 256 }
 0x58a   : > { %1699 = vmatpush3.bf16.msra.mxu1 %v1798_v2  ;;  %p1853_p4 = scmp.lt.s32.totalorder %s2341_s29, %s1851_s12  ;;  %p1854_p6 = scmp.lt.s32.totalorder %s1852_s18, %s1846_s26 }
 0x58b   : > { %v1113_v28 = vsel %vm686_vm3, %v1110_v27, 0.0  ;;  %v1118_v29 = vmul.f32 %v1110_v27, %v1110_v27  ;;  %1700 = vmatprep.subr.bf16.mxu1 %v1947_v3 }
 0x58c   : > { %1114 = vadd.xlane.f32.xlu1 %v1113_v28  ;;  %p1855_p3 = por %p1854_p6, %p1853_p4 }
 0x58d   : > { %v1119_v30 = vsel %vm686_vm3, %v1118_v29, 0.0 }
 0x58e   : > { %1120 = vadd.xlane.f32.xlu0 %v1119_v30  ;;  %1701 = vmatpush3.bf16.msra.mxu1 %v1799_v35 }
 0x58f   : > { %1702 = vmatprep.subr.bf16.mxu1 %v1947_v3  ;;  %s1607_s16 = sshll.u32 %s2462_s3, 7 }
 0x590   : > { %s2339_s30 = scalar_lea.hbm %s2466_s22, %s1607_s16 }
 0x592   : > { %1703 = vmatpush3.bf16.msra.mxu1 %v1800_v36 }
 0x593   : > { %1704 = vmatprep.subr.bf16.mxu1 %v1947_v3 }
 0x596   : > { %1705 = vmatpush3.bf16.msra.mxu1 %v1801_v37 }
 0x597   : > { %1706 = vmatprep.subr.bf16.mxu1 %v1947_v3 }
 0x59a   : > { %1707 = vmatpush3.bf16.msra.mxu1 %v1802_v53 }
 0x59b   : > { %1708 = vmatprep.subr.bf16.mxu1 %v1947_v3  ;;  %v1595_v3 = vld [vmem:[%s653_s23] ss:$0 sm:$0xff]  ;;  %s2464_s23 = sld [smem:[#allocation18_spill]] }
 0x59e   : > { %1709 = vmatpush3.bf16.msra.mxu1 %v1803_v54 }
 0x5a1   : > { %p2467_p0 = scmp.ne.s32.totalorder %s2464_s23, 0 }
 0x5a3   : > { %p1848_p7 = pnand %p1847_p11, %p2467_p0 }
 0x5a5   : > { %p1849_p13 = pneg %p1848_p7 }
 0x5a7   : > { %p1856_p8 = pnand %p1855_p3, %p1849_p13 }
 0x619   : > { %v1115_v38 = vpop.xlane.xlu1 %1114 }
 0x61a   : > { %v1117_v39 = vmul.f32 0.125, %v1115_v38 }
 0x61b   : > { %v1121_v40 = vpop.xlane.xlu0 %1120 }
 0x61c   : > { %v1123_v41 = vmul.f32 %v1117_v39, %v1117_v39  ;;  %v1122_v42 = vmul.f32 0.125, %v1121_v40  ;;  %v1125_v45 = vsub.f32 %v1110_v27, %v1117_v39 }
 0x61e   : > { %v1124_v43 = vsub.f32 %v1122_v42, %v1123_v41 }
 0x620   : > { %v1126_v44 = vadd.f32 1e-05, %v1124_v43 }
 0x622   : > { %1812 = vrsqrt.f32 %v1126_v44 }
 0x62c   : > { %v1813_v46 = vpop.eup %1812 }
 0x62d   : > { %v1128_v48 = vmul.f32 %v1813_v46, %v1125_v45 }
 0x62f   : > { %v1135_v50 = vmul.f32 %v1591_v47, %v1128_v48 }
 0x631   : > { %v1142_v51 = vadd.f32 %v1592_v49, %v1135_v50 }
 0x633   : > { %v1143_v52 = vpack.c.bf16 %v1142_v51, %v1142_v51 }
 0x635   : > { %1691 = vmatmul.mubr.msk.bf16.vlgmr.msra.gmra.mrb[20].mxu0 %vm686_vm3, %v1143_v52 }
 0x708   : > { %v1192_v56 = vpop.f32.mrb[20].mxu0 }
 0x709   : > { %v1193_v57 = vadd.f32 %v1593_v55, %v1192_v56  ;;  %v1692_v58 = vpop.f32.mrb[21].mxu0 }
 0x70a   : > { %v1195_v59 = vpop.f32.mrb[22].mxu0 }
 0x70b   : > { %v1198_v60 = vmax.f32 %v1193_v57, 0.0  ;;  %v1693_v61 = vpop.f32.mrb[23].mxu0 }
 0x70d   : > { %v1199_v62 = vpack.c.bf16 %v1198_v60, %v1198_v60 }
 0x70f   : > { %1711 = vmatmul.mubr.bf16.vlgmr.msra.gmra.mrb[12].mxu1 %v1199_v62 }
 0x7e2   : > { %v1305_v63 = vpop.f32.mrb[12].mxu1 }
 0x7e3   : > { %v1306_v0 = vadd.f32 %v1595_v3, %v1305_v63  ;;  %v1712_v1 = vpop.f32.mrb[13].mxu1 }
 0x7e4   : > { %v1308_v4 = vpop.f32.mrb[14].mxu1 }
 0x7e5   : > { %v1311_v5 = vadd.f32 %v1306_v0, %v1142_v51  ;;  %v1713_v6 = vpop.f32.mrb[15].mxu1 }
 0x7e7   : > { %v1314_v7 = vsel %vm686_vm3, %v1311_v5, 0.0  ;;  %v1318_v8 = vmul.f32 %v1311_v5, %v1311_v5 }
 0x7e8   : > { %1315 = vadd.xlane.f32.xlu0 %v1314_v7 }
 0x7e9   : > { %v1319_v9 = vsel %vm686_vm3, %v1318_v8, 0.0 }
 0x7ec   : > { %1320 = vadd.xlane.f32.xlu0 %v1319_v9 }
 0x875   : > { %v1316_v10 = vpop.xlane.xlu0 %1315 }
 0x876   : > { %v1317_v11 = vmul.f32 0.125, %v1316_v10 }
 0x878   : > { %v1323_v13 = vmul.f32 %v1317_v11, %v1317_v11  ;;  %v1325_v17 = vsub.f32 %v1311_v5, %v1317_v11 }
 0x879   : > { %v1321_v12 = vpop.xlane.xlu0 %1320 }
 0x87a   : > { %v1322_v14 = vmul.f32 0.125, %v1321_v12 }
 0x87c   : > { %v1324_v15 = vsub.f32 %v1322_v14, %v1323_v13 }
 0x87e   : > { %v1326_v16 = vadd.f32 1e-05, %v1324_v15 }
 0x880   : > { %1814 = vrsqrt.f32 %v1326_v16 }
 0x88a   : > { %v1815_v18 = vpop.eup %1814 }
 0x88b   : > { %v1328_v20 = vmul.f32 %v1815_v18, %v1325_v17 }
 0x88d   : > { %v1335_v22 = vmul.f32 %v1604_v19, %v1328_v20 }
 0x88f   : > { %v1342_v23 = vadd.f32 %v1605_v21, %v1335_v22 }
 0x891   : > { %1343 = vst.msk [vmem:[%s2213_s14] sm:$0xff] %vm686_vm3, %v1342_v23 }
 0x892   : > { %1859 = shalt.err (!%p1856_p8)
}
 0x893   : > { %s1860_s14 = scalar_lea.hbm %s2339_s30, 128  ;;  %s1864_s13 = scalar_lea.hbm %s2466_s22, 256 }
 0x894   : > { %p1861_p12 = scmp.ne.s32.totalorder %s2339_s30, %s1860_s14  ;;  %p1865_p5 = scmp.lt.u32.totalorder %s2339_s30, %s2466_s22 }
 0x895   : > { %p1866_p10 = scmp.lt.u32.totalorder %s1864_s13, %s1860_s14  ;;  %p1868_p11 = scmp.lt.u32.totalorder %s1860_s14, %s2339_s30 }
 0x896   : > { %p1862_p1 = pnand %p1861_p12, %p2467_p0 }
 0x897   : > { %p1867_p9 = por %p1866_p10, %p1865_p5 }
 0x898   : > { %p1863_p2 = pneg %p1862_p1 }
 0x899   : > { %p1869_p7 = por %p1868_p11, %p1867_p9 }
 0x89b   : > { %p1870_p13 = pnand %p1869_p7, %p1863_p2 }
 0x89d   : > { %1873 = shalt.err (!%p1870_p13)
}
 0x89e   : > { %1716 = dma.vmem_to_hbm [thread:$0]  (%p2467_p0), %s2341_s29, 128, %s2339_s30, %s1345_s24  }
 0x89f PF: > { %s2468_s27 = sld [smem:[#allocation15_spill]]  ;;  %s2469_s20 = sld [smem:[#allocation8_spill]] }
 0x8a0   : > { %s2470_s17 = sld [smem:[#allocation19_spill]] }
 0x8a5   : > { %p1727_p4 = scmp.ge.s32.totalorder %s2468_s27, 2  ;;  %s1370_s2 = sand.u32 1, %s2469_s20  }
 0x8a6   : > { %p2471_p6 = scmp.ne.s32.totalorder %s2470_s17, 0  ;;  %s1371_s19 = scalar_lea.sflag [#allocation4], %s1370_s2 }
 0x8a8   : > { %p1723_p3 = pnand %p1727_p4, %p2471_p6 }
 0x8aa   : > { %1911 = dma.done.wait (!%p1723_p3), %s1371_s19, 128  }
 0x8ab   : > { %1913 = vsyncadd (!%p1723_p3), %s1371_s19, 4294967168  ;;  %s29_s15 = sadd.s32 1, %s2468_s27   ;;  %s2472_s25 = sld [smem:[#allocation9_spill]] }
 0x8ac   : > { %p26_p8 = scmp.ge.s32.totalorder %s29_s15, 6   ;;  %s2473_s26 = sld [smem:[#allocation10_spill]] }
 0x8ad   : > { %s2474_s27 = sld [smem:[#allocation20_spill]]  ;;  %s2475_s28 = sld [smem:[#allocation13_spill]] }
 0x8ae   : > { %s2476_s29 = sld [smem:[#allocation14_spill]]  ;;  %s2477_s30 = sld [smem:[#allocation16_spill]] }
 0x8af   : > { %s2478_s14 = sld [smem:[#allocation17_spill]]  ;;  %28 = sbr.rel (!%p26_p8) target bundleno = 15 (0xf), region = 157 }
 0x8b6   :  { %1376 = vsyncpa [#allocation3], 1 }
 0x8b7   :  { %1378 = vsyncpa [#allocation3 + $0x1], 1 }
 0x8b8   :  { %1379 = vsyncpa [#allocation4], 1 }
 0x8b9   :  { %1381 = vsyncpa [#allocation4 + $0x1], 1 }

</bundles_post_ra>
